<compile_context>
chip_gen: v6e
topology: v6e:2x2x1
jax: 0.10.0
libtpu: 0.0.40
codegen_flags: <defaults>
</compile_context>

<pallas_src>
import functools

import jax
import jax.numpy as jnp
from jax.experimental import pallas as pl
from jax.experimental.pallas import tpu as pltpu


def _grn1d_kernel(x_ref, w_ref, b_ref, o_ref, *, eps):
    # x_ref: (1, L, C) VMEM block for one batch element (channels-last).
    # w_ref, b_ref: (1, C) VMEM, shared across all grid steps.
    # o_ref: (1, L, C) VMEM output block.
    x = x_ref[0].astype(jnp.float32)                          # (L, C)

    # Global response: L2 norm over the spatial (L) axis, per channel.
    x_g = jnp.sqrt(jnp.sum(x * x, axis=0, keepdims=True))     # (1, C)
    # Normalize by the mean over channels (+ eps).
    denom = jnp.mean(x_g, axis=-1, keepdims=True) + eps       # (1, 1)
    x_n = x_g / denom                                         # (1, C)

    w = w_ref[...].astype(jnp.float32)                        # (1, C)
    b = b_ref[...].astype(jnp.float32)                        # (1, C)

    out = x + b + w * (x * x_n)                               # (L, C), broadcasts over L
    o_ref[0] = out.astype(o_ref.dtype)


def global_response_norm_1d(x, weight, bias, *, eps=1e-6, channels_last=True):
    """Pallas TPU forward of GlobalResponseNorm1D.

    channels_last=True : x has shape (N, L, C); norm over L, channel-mean over C.
    channels_last=False: x has shape (N, C, L); handled by transposing to
                         channels-last, running the same kernel, transposing back.
    """
    if not channels_last:
        out = global_response_norm_1d(
            jnp.transpose(x, (0, 2, 1)), weight, bias, eps=eps, channels_last=True)
        return jnp.transpose(out, (0, 2, 1))

    n, l, c = x.shape
    w2 = weight.reshape(1, c).astype(x.dtype)
    b2 = bias.reshape(1, c).astype(x.dtype)

    kernel = functools.partial(_grn1d_kernel, eps=float(eps))

    # TODO(synk): for (L, C) slabs too large for VMEM, split into a two-pass
    # tiled reduction (stats pass over L tiles, then an apply pass) instead of
    # one resident block per batch element.
    return pl.pallas_call(
        kernel,
        out_shape=jax.ShapeDtypeStruct((n, l, c), x.dtype),
        grid_spec=pltpu.PrefetchScalarGridSpec(
            num_scalar_prefetch=0,
            grid=(n,),
            in_specs=[
                pl.BlockSpec((1, l, c), lambda i: (i, 0, 0)),
                pl.BlockSpec((1, c), lambda i: (0, 0)),
                pl.BlockSpec((1, c), lambda i: (0, 0)),
            ],
            out_specs=pl.BlockSpec((1, l, c), lambda i: (i, 0, 0)),
        ),
        compiler_params=pltpu.CompilerParams(
            dimension_semantics=("parallel",)),
    )(x, w2, b2)


def _ref_grn1d(x, weight, bias, eps=1e-6):
    """Pure-JAX reference, channels-last x of shape (N, L, C)."""
    x_g = jnp.sqrt(jnp.sum(jnp.square(x), axis=1, keepdims=True))   # (N, 1, C)
    x_n = x_g / (jnp.mean(x_g, axis=-1, keepdims=True) + eps)       # (N, 1, C)
    return x + bias.reshape(1, 1, -1) + weight.reshape(1, 1, -1) * x * x_n


if __name__ == "__main__":
    key = jax.random.PRNGKey(0)
    kx, kw, kb = jax.random.split(key, 3)

    # Small shapes: batch=2, seq(L)=16, dim(C)=128 (lane-dense last axis).
    N, L, C = 2, 16, 128
    x = jax.random.normal(kx, (N, L, C), dtype=jnp.float32)
    # Module initializes weight/bias to zeros (output == x); use random values
    # so the test actually exercises the GRN math.
    weight = 0.1 * jax.random.normal(kw, (C,), dtype=jnp.float32)
    bias = 0.1 * jax.random.normal(kb, (C,), dtype=jnp.float32)

    out = global_response_norm_1d(x, weight, bias, eps=1e-6, channels_last=True)
    out = jax.block_until_ready(out)

    ref = _ref_grn1d(x, weight, bias, eps=1e-6)
    assert out.shape == x.shape, out.shape
    assert jnp.allclose(out, ref, rtol=1e-5, atol=1e-5), float(
        jnp.max(jnp.abs(out - ref)))

    # Also exercise the channels_first (NCL) path.
    x_ncl = jnp.transpose(x, (0, 2, 1))
    out_ncl = jax.block_until_ready(
        global_response_norm_1d(x_ncl, weight, bias, eps=1e-6, channels_last=False))
    assert jnp.allclose(out_ncl, jnp.transpose(ref, (0, 2, 1)), rtol=1e-5, atol=1e-5)

    print("KERNEL_OK")
</pallas_src>

<mosaic_0001>
module attributes {stable_mosaic.version = 11 : i64} {
  func.func @_grn1d_kernel(%arg0: i32, %arg1: memref<1x16x128xf32, #tpu.memory_space<vmem>>, %arg2: memref<1x128xf32, #tpu.memory_space<vmem>>, %arg3: memref<1x128xf32, #tpu.memory_space<vmem>>, %arg4: memref<1x16x128xf32, #tpu.memory_space<vmem>>) attributes {dimension_semantics = [#tpu.dimension_semantics<parallel>], iteration_bounds = array<i64: 2>, scalar_prefetch = 0 : i64, scratch_operands = 0 : i64, tpu.core_type = #tpu.core_type<tc>, window_params = [{transform_indices = @transform_0, window_bounds = array<i64: 1, 16, 128>}, {pipeline_mode = #tpu.pipeline_mode<synchronous>, transform_indices = @transform_1, window_bounds = array<i64: 1, 128>}, {pipeline_mode = #tpu.pipeline_mode<synchronous>, transform_indices = @transform_2, window_bounds = array<i64: 1, 128>}, {transform_indices = @transform_3, window_bounds = array<i64: 1, 16, 128>}]} {
    %c0 = arith.constant 0 : index
    %c0_0 = arith.constant 0 : index
    %c0_1 = arith.constant 0 : index
    %0 = vector.load %arg1[%c0, %c0_0, %c0_1] : memref<1x16x128xf32, #tpu.memory_space<vmem>>, vector<1x16x128xf32>
    %1 = vector.shape_cast %0 : vector<1x16x128xf32> to vector<16x128xf32>
    %2 = arith.mulf %1, %1 : vector<16x128xf32>
    %cst = arith.constant dense<0.000000e+00> : vector<128xf32>
    %3 = vector.multi_reduction <add>, %2, %cst [0] : vector<16x128xf32> to vector<128xf32>
    %4 = vector.shape_cast %3 : vector<128xf32> to vector<1x128xf32>
    %5 = math.sqrt %4 : vector<1x128xf32>
    %cst_2 = arith.constant dense<0.000000e+00> : vector<1xf32>
    %6 = vector.multi_reduction <add>, %5, %cst_2 [1] : vector<1x128xf32> to vector<1xf32>
    %7 = vector.shape_cast %6 : vector<1xf32> to vector<1x1xf32>
    %cst_3 = arith.constant 1.280000e+02 : f32
    %8 = vector.broadcast %cst_3 : f32 to vector<1x1xf32>
    %9 = arith.divf %7, %8 : vector<1x1xf32>
    %cst_4 = arith.constant 9.99999997E-7 : f32
    %10 = vector.broadcast %cst_4 : f32 to vector<1x1xf32>
    %11 = arith.addf %9, %10 : vector<1x1xf32>
    %12 = vector.broadcast %11 : vector<1x1xf32> to vector<1x128xf32>
    %13 = arith.divf %5, %12 : vector<1x128xf32>
    %c0_5 = arith.constant 0 : index
    %c0_6 = arith.constant 0 : index
    %14 = vector.load %arg2[%c0_5, %c0_6] : memref<1x128xf32, #tpu.memory_space<vmem>>, vector<1x128xf32>
    %c0_7 = arith.constant 0 : index
    %c0_8 = arith.constant 0 : index
    %15 = vector.load %arg3[%c0_7, %c0_8] : memref<1x128xf32, #tpu.memory_space<vmem>>, vector<1x128xf32>
    %16 = vector.broadcast %15 : vector<1x128xf32> to vector<16x128xf32>
    %17 = arith.addf %1, %16 : vector<16x128xf32>
    %18 = vector.broadcast %13 : vector<1x128xf32> to vector<16x128xf32>
    %19 = arith.mulf %1, %18 : vector<16x128xf32>
    %20 = vector.broadcast %14 : vector<1x128xf32> to vector<16x128xf32>
    %21 = arith.mulf %20, %19 : vector<16x128xf32>
    %22 = arith.addf %17, %21 : vector<16x128xf32>
    %c0_9 = arith.constant 0 : index
    %c0_10 = arith.constant 0 : index
    %c0_11 = arith.constant 0 : index
    %23 = vector.load %arg4[%c0_9, %c0_10, %c0_11] : memref<1x16x128xf32, #tpu.memory_space<vmem>>, vector<1x16x128xf32>
    %24 = vector.shape_cast %23 : vector<1x16x128xf32> to vector<16x128xf32>
    %25 = vector.shape_cast %22 : vector<16x128xf32> to vector<1x16x128xf32>
    tpu.vector_store %arg4[%c0_9, %c0_10, %c0_11], %25 {strides = array<i32>} : memref<1x16x128xf32, #tpu.memory_space<vmem>>, vector<1x16x128xf32>,
    return
  }
  func.func @transform_0(%arg0: i32) -> (i32, i32, i32) {
    %c0_i32 = arith.constant 0 : i32
    %c0_i32_0 = arith.constant 0 : i32
    %c0_i32_1 = arith.constant 0 : i32
    return %arg0, %c0_i32, %c0_i32_0 : i32, i32, i32
  }
  func.func @transform_1(%arg0: i32) -> (i32, i32) {
    %c0_i32 = arith.constant 0 : i32
    %c0_i32_0 = arith.constant 0 : i32
    %c0_i32_1 = arith.constant 0 : i32
    return %c0_i32, %c0_i32_0 : i32, i32
  }
  func.func @transform_2(%arg0: i32) -> (i32, i32) {
    %c0_i32 = arith.constant 0 : i32
    %c0_i32_0 = arith.constant 0 : i32
    %c0_i32_1 = arith.constant 0 : i32
    return %c0_i32, %c0_i32_0 : i32, i32
  }
  func.func @transform_3(%arg0: i32) -> (i32, i32, i32) {
    %c0_i32 = arith.constant 0 : i32
    %c0_i32_0 = arith.constant 0 : i32
    %c0_i32_1 = arith.constant 0 : i32
    return %arg0, %c0_i32, %c0_i32_0 : i32, i32, i32
  }
}

</mosaic_0001>

<bundles_post_ra>
// kernel: tpu_custom_call.1
= control target key start
LH: loop header
LB: loop body
LE: loop exit
PB: predicated region body
PF: predicated region fallthrough
CT: control target
= control target key end

     0   :  { %8 = vsyncpa [#allocation3], 0  ;;  %s681_s0 = inlined_call_operand.hbm [shape: f32[2,16,128], index: 0, kind: input, shape index: {}]   ;;  %s682_s1 = inlined_call_operand.vmem [shape: f32[1,128], index: 1, kind: input, shape index: {}]   ;;  %s683_s2 = inlined_call_operand.vmem [shape: f32[1,128], index: 2, kind: input, shape index: {}]   ;;  %s684_s3 = inlined_call_operand.hbm [shape: f32[2,16,128], index: 3, kind: output, shape index: {}]  }
   0x1   :  { %10 = vsyncpa [#allocation3 + $0x1], 0 }
   0x2   :  { %11 = vsyncpa [#allocation4], 0 }
   0x3   :  { %13 = vsyncpa [#allocation4 + $0x1], 0  ;;  %s517_s12 = smov 0   ;;  %s519_s13 = smov 0  }
   0x4   :  { %s521_s14 = smov 0   ;;  %s523_s15 = smov 0  }
   0x5 LB: > { %s538_s16 = sadd.s32 4294967295, %s489_s15   ;;  %s325_s17 = sadd.s32 4294967294, %s489_s15   ;;  %s489_s15 = sphi %s523_s15, %s699_s15   ;;  %s485_s14 = sphi %s521_s14, %s698_s14   ;;  %s481_s13 = sphi %s519_s13, %s697_s13   ;;  %s477_s12 = sphi %s517_s12, %s696_s12  }
   0x6   : > { %s542_s18 = sadd.s32 1, %s489_s15   ;;  %s26_s19 = sadd.s32 1, %s485_s14 }
   0x7   : > { %s23_s20 = ssub.s32 %s489_s15, %s542_s18  ;;  %p33_p0 = scmp.ne.s32.totalorder %s485_s14, %s481_s13 }
   0x8   : > { %p24_p1 = scmp.eq.s32.totalorder %s23_s20, 0  ;;  %p34_p2 = scmp.eq.s32.totalorder %s489_s15, 0 }
   0x9   : > { %p39_p3 = scmp.ne.s32.totalorder %s481_s13, %s477_s12  ;;  %p40_p4 = scmp.eq.s32.totalorder %s538_s16, 0 }
   0xa   : > { %s554_s21 = scalar_select %p24_p1, %s485_s14, %s26_s19  }
   0xb   : > { %p556_p5 = por %p34_p2, %p33_p0  ;;  %p560_p6 = por %p40_p4, %p39_p3 }
   0xc   : > { %p105_p7 = scmp.eq.s32.totalorder %s538_s16, 1  ;;  %p111_p8 = scmp.eq.s32.totalorder %s325_s17, 1 }
   0xd   : > { %s688_s23 = scalar_select %p560_p6, 1, 0 }
   0xe   : > { %p355_p10 = scmp.lt.s32.totalorder %s489_s15, 2  ;;  %p567_p11 = por %p105_p7, %p33_p0 }
   0xf   : > { %p571_p12 = por %p111_p8, %p39_p3  ;;  %s137_s26 = sand.u32 1, %s485_s14  }
  0x10   : > { %s689_s24 = scalar_select %p567_p11, 1, 0 }
  0x11   : > { %s690_s25 = scalar_select %p571_p12, 1, 0 }
  0x12   : > { %s341_s27 = sshll.u32 %s489_s15, 8  ;;  %s328_s28 = sshll.u32 %s137_s26, 4 }
  0x13   : > { %s580_s4 = scalar_lea.hbm %s681_s0, %s341_s27  ;;  %s141_s5 = scalar_lea.vmem [#allocation2], %s328_s28 }
  0x14   : > { %s148_s6 = sshll.u32 %s141_s5, 4  ;;  %p584_p13 = pnand %p355_p10, %p556_p5  ;;  %s588_s6 = int_to_ptr.vmem [resolvable:$true] %s148_s6 }
  0x15   : > { %s590_s8 = scalar_lea.sflag [#allocation3], %s137_s26  ;;  %s397_s9 = scalar_lea.hbm %s580_s4, 256 }
  0x16   : > { %p398_p0 = scmp.ne.s32.totalorder %s580_s4, %s397_s9  ;;  %p399_p1 = pneg %p584_p13 }
  0x17   : > { %s402_s17 = scalar_lea.hbm %s681_s0, 512  ;;  %p403_p4 = scmp.lt.s32.totalorder %s580_s4, %s681_s0 }
  0x18   : > { %p400_p2 = pnand %p399_p1, %p398_p0  ;;  %p404_p5 = scmp.lt.s32.totalorder %s402_s17, %s397_s9 }
  0x1a   : > { %p401_p3 = pneg %p400_p2  ;;  %p405_p7 = por %p404_p5, %p403_p4 }
  0x1c   : > { %p406_p8 = pnand %p405_p7, %p401_p3 }
  0x1e   : > { %409 = shalt.err (!%p406_p8)
}
  0x1f   : > { %s410_s22 = scalar_lea.vmem %s588_s6, 256  ;;  %s491_s26 = smov [#allocation2]  }
  0x20   : > { %p411_p10 = scmp.ne.s32.totalorder %s588_s6, %s410_s22  ;;  %s415_s27 = sshll.u32 %s491_s26, 4  ;;  %s416_s27 = int_to_ptr.vmem [resolvable:$false] %s415_s27 }
  0x21   : > { %s417_s28 = scalar_lea.vmem %s416_s27, 512  ;;  %p418_p2 = scmp.lt.s32.totalorder %s588_s6, %s416_s27 }
  0x22   : > { %p413_p9 = pnand %p411_p10, %p399_p1  ;;  %p419_p12 = scmp.lt.s32.totalorder %s417_s28, %s410_s22 }
  0x24   : > { %p414_p0 = pneg %p413_p9  ;;  %p420_p11 = por %p419_p12, %p418_p2 }
  0x26   : > { %p421_p6 = pnand %p420_p11, %p414_p0 }
  0x28   : > { %424 = shalt.err (!%p421_p6)
}
  0x29   : > { %s492_s29 = smov 128   ;;  %s493_s30 = smov 8  }
  0x2a   : > { %350 = dma.hbm_to_vmem [thread:$0]  (!%p584_p13), %s580_s4, 256, %s588_s6, %s590_s8, %s492_s29, %s492_s29, %s493_s30  }
  0x2b   : > { %p331_p9 = scmp.ge.s32.totalorder %s489_s15, 1  ;;  %p156_p1 = scmp.lt.s32.totalorder %s489_s15, 3 }
  0x2d   : > { %p157_p3 = pnand %p331_p9, %p156_p1 }
  0x2e   : > { %s614_s5 = sand.u32 (!%p157_p3), 1, %s481_s13   ;;  %p692_p6 = scmp.ne.s32.totalorder (!%p157_p3), %s688_s23, 0 }
  0x2f   : > { %160 = sbr.rel (%p157_p3) target bundleno = 266 (0x10a), region = 32  ;;  %s332_s9 = sshll.u32 (!%p157_p3), %s614_s5, 4 }
  0x30   : > { %s163_s10 = scalar_lea.sflag (!%p157_p3), [#allocation3], %s614_s5  ;;  %s166_s11 = scalar_lea.vmem (!%p157_p3), [#allocation2], %s332_s9 }
  0x34   : > { %468 = dma.done.wait (%p692_p6), %s163_s10, 256  }
  0x35   : > { %470 = vsyncadd (%p692_p6), %s163_s10, 4294967040  ;;  %v189_v0 = vld [vmem:[%s166_s11] sm:$0xff]  ;;  %v190_v1 = vld [vmem:[%s166_s11 + $0x8] sm:$0xff]  ;;  %s342_s8 = sshll.u32 %s538_s16, 8  ;;  %s188_s17 = scalar_lea.vmem [#allocation5], %s332_s9 }
  0x36   : > { %v191_v2 = vmul.f32 %v189_v0, %v189_v0  ;;  %v192_v3 = vmul.f32 %v190_v1, %v190_v1  ;;  %v334_v20 = vld [vmem:[%s683_s2] ss:$0 sm:$0xff]  ;;  %s252_s19 = sshll.u32 %s188_s17, 4  ;;  %s636_s26 = scalar_lea.hbm %s684_s3, %s342_s8  ;;  %s638_s19 = int_to_ptr.vmem [resolvable:$true] %s252_s19 }
  0x37   : > { %v335_v22 = vld [vmem:[%s682_s1] ss:$0 sm:$0xff]  ;;  %v222_v25 = vadd.f32 %v334_v20, %v189_v0  ;;  %v223_v26 = vadd.f32 %v334_v20, %v190_v1  ;;  %s239_s16 = scalar_lea.sflag [#allocation4], %s614_s5  ;;  %s425_s27 = scalar_lea.vmem %s638_s19, 256 }
  0x38   : > { %v193_v4 = vadd.f32 %v192_v3, %v191_v2  ;;  %p426_p11 = scmp.ne.s32.totalorder %s638_s19, %s425_s27  ;;  %p693_p12 = scmp.ne.s32.totalorder %s689_s24, 0 }
  0x39   : > { %s494_s28 = smov [#allocation5]  }
  0x3a   : > { %v194_v5 = vrot.slane %v193_v4, 4  ;;  %p427_p13 = pnand %p426_p11, %p693_p12  ;;  %s429_s29 = sshll.u32 %s494_s28, 4  ;;  %s430_s29 = int_to_ptr.vmem [resolvable:$false] %s429_s29 }
  0x3b   : > { %s431_s30 = scalar_lea.vmem %s430_s29, 512  ;;  %p432_p5 = scmp.lt.s32.totalorder %s638_s19, %s430_s29 }
  0x3c   : > { %v195_v6 = vadd.f32 %v194_v5, %v193_v4  ;;  %p428_p4 = pneg %p427_p13  ;;  %p433_p7 = scmp.lt.s32.totalorder %s431_s30, %s425_s27 }
  0x3e   : > { %v196_v7 = vrot.slane %v195_v6, 2  ;;  %p434_p8 = por %p433_p7, %p432_p5 }
  0x40   : > { %v197_v8 = vadd.f32 %v196_v7, %v195_v6  ;;  %p435_p10 = pnand %p434_p8, %p428_p4 }
  0x42   : > { %v198_v9 = vrot.slane %v197_v8, 1 }
  0x44   : > { %v199_v10 = vadd.f32 %v198_v9, %v197_v8 }
  0x46   : > { %393 = vrsqrt.f32 %v199_v10  ;;  %vm202_vm0 = vcmp.eq.f32.partialorder %v199_v10, inf  ;;  %v205_v12 = vand.u32 2147483648, %v199_v10  ;;  %vm204_vm1 = vcmp.eq.f32.partialorder %v199_v10, 0.0 }
  0x53   : > { %v394_v11 = vpop.eup %393 }
  0x54   : > { %v201_v13 = vmul.f32 %v394_v11, %v199_v10 }
  0x56   : > { %v203_v14 = vsel %vm202_vm0, %v199_v10, %v201_v13 }
  0x57   : > { %v206_v15 = vsel %vm204_vm1, %v205_v12, %v203_v14 }
  0x58   : > { %207 = vadd.xlane.f32.xlu0 %v206_v15 }
  0xe1   : > { %v208_v16 = vpop.xlane.xlu0 %207 }
  0xe2   : > { %v210_v17 = vmul.f32 0.0078125, %v208_v16 }
  0xe4   : > { %v211_v18 = vadd.f32 1e-06, %v210_v17 }
  0xe6   : > { %395 = vrcp.f32 %v211_v18 }
  0xf3   : > { %v396_v19 = vpop.eup %395 }
  0xf4   : > { %v213_v21 = vmul.f32 %v396_v19, %v206_v15 }
  0xf6   : > { %v224_v23 = vmul.f32 %v213_v21, %v189_v0  ;;  %v225_v24 = vmul.f32 %v213_v21, %v190_v1 }
  0xf8   : > { %v232_v27 = vmul.f32 %v335_v22, %v224_v23  ;;  %v233_v28 = vmul.f32 %v335_v22, %v225_v24 }
  0xfa   : > { %v234_v29 = vadd.f32 %v232_v27, %v222_v25  ;;  %v235_v30 = vadd.f32 %v233_v28, %v223_v26 }
  0xfc   : > { %236 = vst [vmem:[%s188_s17] sm:$0xff] %v234_v29  ;;  %237 = vst [vmem:[%s188_s17 + $0x8] sm:$0xff] %v235_v30 }
  0xfd   : > { %438 = shalt.err (!%p435_p10)
}
  0xfe   : > { %s439_s9 = scalar_lea.hbm %s636_s26, 256  ;;  %s443_s23 = scalar_lea.hbm %s684_s3, 512 }
  0xff   : > { %p440_p0 = scmp.ne.s32.totalorder %s636_s26, %s439_s9  ;;  %p444_p1 = scmp.lt.s32.totalorder %s636_s26, %s684_s3 }
 0x100   : > { %p445_p3 = scmp.lt.s32.totalorder %s443_s23, %s439_s9 }
 0x101   : > { %p441_p2 = pnand %p440_p0, %p693_p12 }
 0x102   : > { %p446_p6 = por %p445_p3, %p444_p1 }
 0x103   : > { %p442_p9 = pneg %p441_p2 }
 0x105   : > { %p447_p11 = pnand %p446_p6, %p442_p9 }
 0x107   : > { %450 = shalt.err (!%p447_p11)
}
 0x108   : > { %s495_s7 = smov 128   ;;  %s496_s8 = smov 8  }
 0x109   : > { %345 = dma.vmem_to_hbm [thread:$0]  (%p693_p12), %s638_s19, 256, %s636_s26, %s239_s16, %s495_s7, %s495_s7, %s496_s8  }
 0x10a PF: > { %s267_s17 = sand.u32 1, %s477_s12   ;;  %p694_p13 = scmp.ne.s32.totalorder %s690_s25, 0 }
 0x10b   : > { %p695_p4 = scmp.ge.s32.totalorder %s489_s15, 2  ;;  %s268_s20 = scalar_lea.sflag [#allocation4], %s267_s17 }
 0x10d   : > { %p352_p5 = pnand %p695_p4, %p694_p13 }
 0x10f   : > { %p353_p7 = pneg %p352_p5 }
 0x111   : > { %472 = dma.done.wait (%p353_p7), %s268_s20, 256  }
 0x112   : > { %474 = vsyncadd (%p353_p7), %s268_s20, 4294967040  ;;  %p16_p8 = scmp.ge.s32.totalorder %s542_s18, 4   ;;  %s696_s12 = smov %s481_s13 }
 0x113   : > { %s697_s13 = smov %s485_s14  ;;  %s698_s14 = smov %s554_s21 }
 0x114   : > { %s699_s15 = smov %s542_s18  ;;  %18 = sbr.rel (!%p16_p8) target bundleno = 5 (0x5), region = 77 }
 0x119   :  { %273 = vsyncpa [#allocation3], 1 }
 0x11a   :  { %275 = vsyncpa [#allocation3 + $0x1], 1 }
 0x11b   :  { %276 = vsyncpa [#allocation4], 1 }
 0x11c   :  { %278 = vsyncpa [#allocation4 + $0x1], 1 }

</bundles_post_ra>
